<compile_context>
chip_gen: v6e
topology: v6e:2x2x1
jax: 0.10.0
libtpu: 0.0.40
codegen_flags: <defaults>
</compile_context>

<pallas_src>
import functools

import jax
import jax.numpy as jnp
from jax.experimental import pallas as pl
from jax.experimental.pallas import tpu as pltpu


def _round_up(a: int, b: int) -> int:
    return (a + b - 1) // b * b


# ----------------------------------------------------------------------------
# Kernel
# ----------------------------------------------------------------------------
def _ffn_kernel(x_ref, w1_ref, b1_ref, w2_ref, b2_ref, o_ref, acc_ref, *, nff):
    # x_ref:  (tm, d_model_p)   bf16
    # w1_ref: (d_model_p, tff)  bf16      b1_ref: (1, tff)        f32
    # w2_ref: (tff, d_model_p)  bf16      b2_ref: (1, d_model_p)  f32
    # o_ref:  (tm, d_model_p)   x.dtype   acc_ref: (tm, d_model_p) f32 scratch
    j = pl.program_id(1)

    # First matmul on the MXU (bf16 operands, f32 accumulation); bias + ReLU
    # stay in f32 on the VPU (v5e VPU has no bf16).
    h = jnp.dot(x_ref[...], w1_ref[...], preferred_element_type=jnp.float32)
    h = jnp.maximum(h + b1_ref[...], 0.0)
    # TODO(synk): dropout is the identity in eval mode; training-mode dropout
    # would build a keep-mask with pltpu.prng_seed / pltpu.prng_random_bits.

    # Partial second matmul for this d_ff chunk; ReLU is elementwise, so the
    # chunked sum over j is exact.
    partial = jnp.dot(h.astype(w2_ref.dtype), w2_ref[...],
                      preferred_element_type=jnp.float32)

    if nff == 1:
        # Single reduction step: skip the accumulator round-trip entirely.
        o_ref[...] = (partial + b2_ref[...]).astype(o_ref.dtype)
    else:
        @pl.when(j == 0)
        def _():
            acc_ref[...] = partial

        @pl.when(jnp.logical_and(j > 0, j < nff - 1))
        def _():
            acc_ref[...] += partial

        # Fold the epilogue into the last step: no extra acc store + reload.
        @pl.when(j == nff - 1)
        def _():
            o_ref[...] = (acc_ref[...] + partial + b2_ref[...]).astype(o_ref.dtype)


# ----------------------------------------------------------------------------
# Generation-aware tile policy
# ----------------------------------------------------------------------------
def _tpu_generation_and_vmem():
    gen = 6
    vmem_cap = 64 * 1024 * 1024
    try:
        vmem_cap = int(pltpu.get_tpu_info().vmem_capacity_bytes)
    except Exception:
        pass
    try:
        kind = jax.devices()[0].device_kind.lower()
        for g in (7, 6, 5, 4):
            if f"v{g}" in kind:
                gen = g
                break
    except Exception:
        pass
    return gen, vmem_cap


def _vmem_footprint_bytes(tm, tff, d_model_p, out_itemsize):
    bf16, f32 = 2, 4
    b = 0
    b += 2 * tm * d_model_p * bf16           # x block (double-buffered)
    b += 2 * d_model_p * tff * bf16          # W1 chunk
    b += 2 * tff * d_model_p * bf16          # W2 chunk
    b += 2 * 8 * tff * f32                   # b1 chunk (sublane-padded)
    b += 2 * 8 * d_model_p * f32             # b2
    b += 2 * tm * d_model_p * out_itemsize   # out block
    b += tm * d_model_p * f32                # f32 accumulator scratch
    b += tm * tff * (f32 + bf16)             # hidden h (f32) + its bf16 copy
    return b


def _tile_config(M, d_model_p, d_ff_p, out_itemsize):
    gen, vmem_cap = _tpu_generation_and_vmem()

    # Arithmetic intensity on the streamed weights ≈ tm flops/byte.
    # Roofline knees: v5e ~240, v6e ~656, v7x ~311 per TC.
    if gen >= 7:
        tm_target, tff_target = 512, 256
    elif gen == 6:
        tm_target, tff_target = 1024, 256
    else:  # v5e and older
        tm_target, tff_target = 384, 512

    # Scoped VMEM: ~78% of physical capacity (100 MiB on 128 MiB chips,
    # ~50 MiB on v7x's 64 MiB); blocks get ~85% of that as headroom for
    # compiler-internal scratch.
    vmem_limit = max(32 * 1024 * 1024, int(0.78 * vmem_cap))
    budget = int(0.85 * vmem_limit)

    # Row tile: bf16-friendly (multiple of 16; multiple of 128 for real M).
    if M >= 128:
        tm = _round_up(min(tm_target, _round_up(M, 128)), 128)
    else:
        tm = _round_up(max(M, 1), 16)
    # v7x: keep at least 2 row tiles so both TensorCores get work.
    if gen >= 7 and M > tm:
        tm = min(tm, max(256, _round_up((M + 1) // 2, 256)))

    # d_ff chunk: multiple of 128, no larger than the padded d_ff.
    tff = _round_up(min(tff_target, d_ff_p), 128)

    # Auto-shrink until the block set fits (guards the untiled d_model
    # dimension on v7x / very large d_model).
    # TODO(synk): for d_model >= ~8192 on v7x an output-column (d_model)
    # tiling path would beat shrinking tm/tff; not implemented here.
    while _vmem_footprint_bytes(tm, tff, d_model_p, out_itemsize) > budget:
        if tff > 256:
            tff //= 2
        elif tm > 256:
            tm = max(256, tm // 2)
        elif tm > 16:
            tm = max(16, tm // 2)
        elif tff > 128:
            tff //= 2
        else:
            break
    return tm, tff, vmem_limit


# ----------------------------------------------------------------------------
# One-time weight preparation (outside the hot path)
# ----------------------------------------------------------------------------
def prepare_ffn_params(w1, b1, w2, b2):
    """Pad weights to 128-aligned shapes and cast to bf16 ONCE.

    w1: (d_model, d_ff), w2: (d_ff, d_model) — transposed vs nn.Linear's
    (out, in) layout, so the kernel computes x @ W + b.
    """
    d_model, d_ff = w1.shape
    d_model_p = _round_up(d_model, 128)
    d_ff_p = _round_up(d_ff, 128)
    w1_p = jnp.pad(w1, ((0, d_model_p - d_model), (0, d_ff_p - d_ff))
                   ).astype(jnp.bfloat16)
    w2_p = jnp.pad(w2, ((0, d_ff_p - d_ff), (0, d_model_p - d_model))
                   ).astype(jnp.bfloat16)
    b1_p = jnp.pad(b1.reshape(1, d_ff).astype(jnp.float32),
                   ((0, 0), (0, d_ff_p - d_ff)))
    b2_p = jnp.pad(b2.reshape(1, d_model).astype(jnp.float32),
                   ((0, 0), (0, d_model_p - d_model)))
    return dict(w1=w1_p, b1=b1_p, w2=w2_p, b2=b2_p,
                d_model=d_model, d_ff=d_ff,
                d_model_p=d_model_p, d_ff_p=d_ff_p)


# ----------------------------------------------------------------------------
# Hot path
# ----------------------------------------------------------------------------
@functools.partial(
    jax.jit,
    static_argnames=("d_model", "d_model_p", "d_ff_p", "tm", "tff", "vmem_limit"))
def _ffn_pallas(x, w1_p, b1_p, w2_p, b2_p, *, d_model, d_model_p, d_ff_p,
                tm, tff, vmem_limit):
    out_dtype = x.dtype
    B, S, _ = x.shape
    M = B * S
    M_p = _round_up(M, tm)

    x_p = jnp.pad(x.reshape(M, d_model),
                  ((0, M_p - M), (0, d_model_p - d_model))).astype(jnp.bfloat16)

    grid = (M_p // tm, d_ff_p // tff)

    # Advisory cost estimate with realistic HBM traffic: W1/W2 (and biases)
    # are re-streamed once per row tile; x and out move once.
    flops = 4 * M_p * d_model_p * d_ff_p
    bytes_accessed = (grid[0] * (w1_p.size + w2_p.size) * 2
                      + grid[0] * (b1_p.size + b2_p.size) * 4
                      + x_p.size * 2
                      + M_p * d_model_p * jnp.dtype(out_dtype).itemsize)

    kernel = functools.partial(_ffn_kernel, nff=grid[1])

    out_p = pl.pallas_call(
        kernel,
        out_shape=jax.ShapeDtypeStruct((M_p, d_model_p), out_dtype),
        grid_spec=pltpu.PrefetchScalarGridSpec(
            num_scalar_prefetch=0,
            grid=grid,
            in_specs=[
                pl.BlockSpec((tm, d_model_p), lambda i, j: (i, 0)),    # x rows
                pl.BlockSpec((d_model_p, tff), lambda i, j: (0, j)),   # W1 chunk
                pl.BlockSpec((1, tff), lambda i, j: (0, j)),           # b1 chunk
                pl.BlockSpec((tff, d_model_p), lambda i, j: (j, 0)),   # W2 chunk
                pl.BlockSpec((1, d_model_p), lambda i, j: (0, 0)),     # b2
            ],
            out_specs=pl.BlockSpec((tm, d_model_p), lambda i, j: (i, 0)),
            scratch_shapes=[pltpu.VMEM((tm, d_model_p), jnp.float32)],
        ),
        compiler_params=pltpu.CompilerParams(
            dimension_semantics=("parallel", "arbitrary"),
            vmem_limit_bytes=vmem_limit,
        ),
        cost_estimate=pl.CostEstimate(
            flops=flops, transcendentals=0, bytes_accessed=bytes_accessed),
    )(x_p, w1_p, b1_p, w2_p, b2_p)

    return out_p[:M, :d_model].reshape(B, S, d_model)


def feed_forward_block(x, params):
    """Eval-mode FeedForwardBlock: linear_2(relu(linear_1(x)))."""
    B, S, d_model = x.shape
    assert d_model == params["d_model"]
    tm, tff, vmem_limit = _tile_config(
        B * S, params["d_model_p"], params["d_ff_p"],
        jnp.dtype(x.dtype).itemsize)
    return _ffn_pallas(
        x, params["w1"], params["b1"], params["w2"], params["b2"],
        d_model=d_model, d_model_p=params["d_model_p"],
        d_ff_p=params["d_ff_p"], tm=tm, tff=tff, vmem_limit=vmem_limit)


# ----------------------------------------------------------------------------
# Demo / self-test
# ----------------------------------------------------------------------------
def _init_linear_params(key, fan_in, fan_out, dtype=jnp.float32):
    # Mimic nn.Linear default init: U(-1/sqrt(fan_in), 1/sqrt(fan_in)).
    kw, kb = jax.random.split(key)
    bound = 1.0 / (fan_in ** 0.5)
    w = jax.random.uniform(kw, (fan_in, fan_out), dtype, -bound, bound)
    b = jax.random.uniform(kb, (1, fan_out), dtype, -bound, bound)
    return w, b


if __name__ == "__main__":
    key = jax.random.PRNGKey(0)
    k_x, k_l1, k_l2 = jax.random.split(key, 3)

    # Small shapes: batch=2, seq=8, d_model=32, d_ff=64.
    B, S, d_model, d_ff = 2, 8, 32, 64

    x = jax.random.normal(k_x, (B, S, d_model), dtype=jnp.float32)
    w1, b1 = _init_linear_params(k_l1, d_model, d_ff)
    w2, b2 = _init_linear_params(k_l2, d_ff, d_model)

    # Pad/cast weights ONCE, outside the hot path.
    params = prepare_ffn_params(w1, b1, w2, b2)

    out = feed_forward_block(x, params)
    out = jax.block_until_ready(out)
    assert out.shape == (B, S, d_model)

    # Reference 1: mirrors kernel numerics (bf16 operands, f32 accumulation).
    xb = x.reshape(-1, d_model).astype(jnp.bfloat16)
    w1b, w2b = w1.astype(jnp.bfloat16), w2.astype(jnp.bfloat16)
    h_ref = jnp.maximum(
        jnp.dot(xb, w1b, preferred_element_type=jnp.float32) + b1, 0.0)
    ref_bf16 = (jnp.dot(h_ref.astype(jnp.bfloat16), w2b,
                        preferred_element_type=jnp.float32) + b2
                ).reshape(B, S, d_model)
    assert jnp.allclose(out, ref_bf16, atol=2e-3, rtol=2e-3), float(
        jnp.max(jnp.abs(out - ref_bf16)))

    # Reference 2: pure-f32 PyTorch semantics (loose tolerance: bf16 MXU path).
    ref_f32 = (jnp.maximum(x.reshape(-1, d_model) @ w1 + b1, 0.0) @ w2 + b2
               ).reshape(B, S, d_model)
    assert jnp.allclose(out, ref_f32, atol=5e-2, rtol=5e-2), float(
        jnp.max(jnp.abs(out - ref_f32)))

    print("KERNEL_OK")
</pallas_src>

<mosaic_0001>
module attributes {stable_mosaic.version = 11 : i64} {
  func.func @_ffn_kernel(%arg0: i32, %arg1: i32, %arg2: memref<16x128xbf16, #tpu.memory_space<vmem>>, %arg3: memref<128x128xbf16, #tpu.memory_space<vmem>>, %arg4: memref<1x128xf32, #tpu.memory_space<vmem>>, %arg5: memref<128x128xbf16, #tpu.memory_space<vmem>>, %arg6: memref<1x128xf32, #tpu.memory_space<vmem>>, %arg7: memref<16x128xf32, #tpu.memory_space<vmem>>, %arg8: memref<16x128xf32, #tpu.memory_space<vmem>>) attributes {dimension_semantics = [#tpu.dimension_semantics<parallel>, #tpu.dimension_semantics<arbitrary>], iteration_bounds = array<i64: 1, 1>, scalar_prefetch = 0 : i64, scratch_operands = 1 : i64, tpu.core_type = #tpu.core_type<tc>, window_params = [{transform_indices = @transform_0, window_bounds = array<i64: 16, 128>}, {transform_indices = @transform_1, window_bounds = array<i64: 128, 128>}, {transform_indices = @transform_2, window_bounds = array<i64: 1, 128>}, {transform_indices = @transform_3, window_bounds = array<i64: 128, 128>}, {pipeline_mode = #tpu.pipeline_mode<synchronous>, transform_indices = @transform_4, window_bounds = array<i64: 1, 128>}, {transform_indices = @transform_5, window_bounds = array<i64: 16, 128>}]} {
    %c0 = arith.constant 0 : index
    %c0_0 = arith.constant 0 : index
    %0 = vector.load %arg2[%c0, %c0_0] : memref<16x128xbf16, #tpu.memory_space<vmem>>, vector<16x128xbf16>
    %c0_1 = arith.constant 0 : index
    %c0_2 = arith.constant 0 : index
    %1 = vector.load %arg3[%c0_1, %c0_2] : memref<128x128xbf16, #tpu.memory_space<vmem>>, vector<128x128xbf16>
    %cst = arith.constant dense<0.000000e+00> : vector<16x128xf32>
    %2 = tpu.matmul %0, %1, %cst {dimension_numbers = #tpu.dot_dimension_numbers<[1], [0], [0], [1], [0, 0, 1, 1], [], []>} : vector<16x128xbf16>, vector<128x128xbf16>, vector<16x128xf32> -> vector<16x128xf32>
    %c0_3 = arith.constant 0 : index
    %c0_4 = arith.constant 0 : index
    %3 = vector.load %arg4[%c0_3, %c0_4] : memref<1x128xf32, #tpu.memory_space<vmem>>, vector<1x128xf32>
    %4 = vector.broadcast %3 : vector<1x128xf32> to vector<16x128xf32>
    %5 = arith.addf %2, %4 : vector<16x128xf32>
    %cst_5 = arith.constant 0.000000e+00 : f32
    %6 = vector.broadcast %cst_5 : f32 to vector<16x128xf32>
    %7 = arith.maximumf %5, %6 : vector<16x128xf32>
    %8 = arith.truncf %7 : vector<16x128xf32> to vector<16x128xbf16>
    %c0_6 = arith.constant 0 : index
    %c0_7 = arith.constant 0 : index
    %9 = vector.load %arg5[%c0_6, %c0_7] : memref<128x128xbf16, #tpu.memory_space<vmem>>, vector<128x128xbf16>
    %cst_8 = arith.constant dense<0.000000e+00> : vector<16x128xf32>
    %10 = tpu.matmul %8, %9, %cst_8 {dimension_numbers = #tpu.dot_dimension_numbers<[1], [0], [0], [1], [0, 0, 1, 1], [], []>} : vector<16x128xbf16>, vector<128x128xbf16>, vector<16x128xf32> -> vector<16x128xf32>
    %c0_9 = arith.constant 0 : index
    %c0_10 = arith.constant 0 : index
    %11 = vector.load %arg6[%c0_9, %c0_10] : memref<1x128xf32, #tpu.memory_space<vmem>>, vector<1x128xf32>
    %12 = vector.broadcast %11 : vector<1x128xf32> to vector<16x128xf32>
    %13 = arith.addf %10, %12 : vector<16x128xf32>
    %c0_11 = arith.constant 0 : index
    %c0_12 = arith.constant 0 : index
    %14 = vector.load %arg7[%c0_11, %c0_12] : memref<16x128xf32, #tpu.memory_space<vmem>>, vector<16x128xf32>
    tpu.vector_store %arg7[%c0_11, %c0_12], %13 {strides = array<i32>} : memref<16x128xf32, #tpu.memory_space<vmem>>, vector<16x128xf32>,
    return
  }
  func.func @transform_0(%arg0: i32, %arg1: i32) -> (i32, i32) {
    %c0_i32 = arith.constant 0 : i32
    %c0_i32_0 = arith.constant 0 : i32
    return %arg0, %c0_i32 : i32, i32
  }
  func.func @transform_1(%arg0: i32, %arg1: i32) -> (i32, i32) {
    %c0_i32 = arith.constant 0 : i32
    %c0_i32_0 = arith.constant 0 : i32
    return %c0_i32, %arg1 : i32, i32
  }
  func.func @transform_2(%arg0: i32, %arg1: i32) -> (i32, i32) {
    %c0_i32 = arith.constant 0 : i32
    %c0_i32_0 = arith.constant 0 : i32
    return %c0_i32, %arg1 : i32, i32
  }
  func.func @transform_3(%arg0: i32, %arg1: i32) -> (i32, i32) {
    %c0_i32 = arith.constant 0 : i32
    %c0_i32_0 = arith.constant 0 : i32
    return %arg1, %c0_i32 : i32, i32
  }
  func.func @transform_4(%arg0: i32, %arg1: i32) -> (i32, i32) {
    %c0_i32 = arith.constant 0 : i32
    %c0_i32_0 = arith.constant 0 : i32
    %c0_i32_1 = arith.constant 0 : i32
    return %c0_i32, %c0_i32_0 : i32, i32
  }
  func.func @transform_5(%arg0: i32, %arg1: i32) -> (i32, i32) {
    %c0_i32 = arith.constant 0 : i32
    %c0_i32_0 = arith.constant 0 : i32
    return %arg0, %c0_i32 : i32, i32
  }
}

</mosaic_0001>

<bundles_post_ra>
// kernel: _ffn_pallas.1
= control target key start
LH: loop header
LB: loop body
LE: loop exit
PB: predicated region body
PF: predicated region fallthrough
CT: control target
= control target key end

     0   :  { %10 = vsyncpa [#allocation4], 0  ;;  %s493_s0 = inlined_call_operand.vmem [shape: bf16[16,128], index: 0, kind: input, shape index: {}]   ;;  %s494_s1 = inlined_call_operand.hbm [shape: bf16[128,128], index: 1, kind: input, shape index: {}]   ;;  %s495_s2 = inlined_call_operand.vmem [shape: f32[1,128], index: 2, kind: input, shape index: {}]   ;;  %s496_s3 = inlined_call_operand.hbm [shape: bf16[128,128], index: 3, kind: input, shape index: {}]   ;;  %s497_s4 = inlined_call_operand.vmem [shape: f32[1,128], index: 4, kind: input, shape index: {}]   ;;  %s498_s5 = inlined_call_operand.vmem [shape: f32[16,128], index: 5, kind: output, shape index: {}]  }
   0x1   :  { %11 = vsyncpa [#allocation6], 0  ;;  %s436_s18 = smov [#allocation3]  }
   0x2   :  { %s19_s19 = sshll.u32 %s436_s18, 4  ;;  %s20_s19 = int_to_ptr.vmem [resolvable:$true] %s19_s19 }
   0x3   :  { %s400_s20 = scalar_lea.vmem %s20_s19, 1024  ;;  %p405_p1 = scmp.lt.s32.totalorder %s20_s19, %s20_s19 }
   0x4   :  { %p401_p0 = scmp.ne.s32.totalorder %s20_s19, %s400_s20  ;;  %p406_p2 = scmp.lt.s32.totalorder %s400_s20, %s400_s20 }
   0x6   :  { %p407_p3 = por %p406_p2, %p405_p1 }
   0x8   :  { %p408_p4 = pnand %p407_p3, %p401_p0 }
   0xa   :  { %411 = shalt.err (!%p408_p4)
}
   0xb   :  { %s437_s21 = smov 64   ;;  %s438_s22 = smov 4  }
   0xc   :  { %25 = dma.hbm_to_vmem [thread:$0]  %s494_s1, 1024, %s20_s19, [#allocation4], %s437_s21, %s437_s21, %s438_s22  }
   0xd   :  { %s439_s25 = smov [#allocation5]  }
   0xe   :  { %s33_s26 = sshll.u32 %s439_s25, 4  ;;  %s34_s26 = int_to_ptr.vmem [resolvable:$true] %s33_s26 }
   0xf   :  { %s420_s27 = scalar_lea.vmem %s34_s26, 1024  ;;  %p425_p6 = scmp.lt.s32.totalorder %s34_s26, %s34_s26 }
  0x10   :  { %p421_p5 = scmp.ne.s32.totalorder %s34_s26, %s420_s27  ;;  %p426_p7 = scmp.lt.s32.totalorder %s420_s27, %s420_s27 }
  0x12   :  { %p427_p8 = por %p426_p7, %p425_p6 }
  0x14   :  { %p428_p9 = pnand %p427_p8, %p421_p5 }
  0x16   :  { %431 = shalt.err (!%p428_p9)
}
  0x17   :  { %39 = dma.hbm_to_vmem [thread:$0]  %s496_s3, 1024, %s34_s26, [#allocation6], %s437_s21, %s437_s21, %s438_s22  }
  0x18   :  { %432 = dma.done.wait [#allocation4], 1024  }
  0x19   :  { %433 = vsyncadd [#allocation4], 4294966272 }
  0x1a   :  { %434 = dma.done.wait [#allocation6], 1024  }
  0x1b   :  { %435 = vsyncadd [#allocation6], 4294966272  ;;  %v440_v0 = vmov 0.0   ;;  %vm441_vm0 = vmmov 0   ;;  %v375_v1 = vld [vmem:[#allocation3 + $0x38] sm:$0xff]   ;;  %v376_v2 = vld [vmem:[#allocation3 + $0x30] sm:$0xff]  }
  0x1c   :  { %329 = vmatprep.subr.bf16.mxu0 %v440_v0  ;;  %345 = vmatprep.mubr.msk.bf16.mxu0 %vm441_vm0, %v440_v0  ;;  %v377_v3 = vld [vmem:[#allocation3 + $0x28] sm:$0xff]   ;;  %v384_v4 = vld [vmem:[#allocation5 + $0x38] sm:$0xff]   ;;  %v378_v5 = vld [vmem:[#allocation3 + $0x20] sm:$0xff]  }
  0x1d   :  { %349 = vmatprep.subr.bf16.mxu1 %v440_v0  ;;  %365 = vmatprep.mubr.msk.bf16.mxu1 %vm441_vm0, %v440_v0  ;;  %v385_v6 = vld [vmem:[#allocation5 + $0x30] sm:$0xff]   ;;  %v379_v7 = vld [vmem:[#allocation3 + $0x18] sm:$0xff]   ;;  %v386_v8 = vld [vmem:[#allocation5 + $0x28] sm:$0xff]  }
  0x1e   :  { %330 = vmatpush3.bf16.msra.mxu0 %v375_v1  ;;  %350 = vmatpush3.bf16.msra.mxu1 %v384_v4  ;;  %v380_v9 = vld [vmem:[#allocation3 + $0x10] sm:$0xff]   ;;  %v387_v10 = vld [vmem:[#allocation5 + $0x20] sm:$0xff]   ;;  %v381_v11 = vld [vmem:[#allocation3 + $0x8] sm:$0xff]  }
  0x1f   :  { %331 = vmatprep.subr.bf16.mxu0 %v440_v0  ;;  %351 = vmatprep.subr.bf16.mxu1 %v440_v0  ;;  %v388_v12 = vld [vmem:[#allocation5 + $0x18] sm:$0xff]   ;;  %v382_v13 = vld [vmem:[#allocation3] sm:$0xff]   ;;  %v389_v15 = vld [vmem:[#allocation5 + $0x10] sm:$0xff]  }
  0x20   :  { %v383_v14 = vld [vmem:[%s493_s0] sm:$0xff]   ;;  %v390_v16 = vld [vmem:[#allocation5 + $0x8] sm:$0xff]  }
  0x21   :  { %v391_v17 = vld [vmem:[#allocation5] sm:$0xff]  }
  0x22   :  { %332 = vmatpush3.bf16.msra.mxu0 %v376_v2  ;;  %352 = vmatpush3.bf16.msra.mxu1 %v385_v6  ;;  %v292_v18 = vld [vmem:[%s495_s2] ss:$0 sm:$0xff] }
  0x23   :  { %333 = vmatprep.subr.bf16.mxu0 %v440_v0  ;;  %353 = vmatprep.subr.bf16.mxu1 %v440_v0  ;;  %v302_v28 = vld [vmem:[%s497_s4] ss:$0 sm:$0xff] }
  0x26   :  { %334 = vmatpush3.bf16.msra.mxu0 %v377_v3  ;;  %354 = vmatpush3.bf16.msra.mxu1 %v386_v8 }
  0x27   :  { %335 = vmatprep.subr.bf16.mxu0 %v440_v0  ;;  %355 = vmatprep.subr.bf16.mxu1 %v440_v0 }
  0x2a   :  { %336 = vmatpush3.bf16.msra.mxu0 %v378_v5  ;;  %356 = vmatpush3.bf16.msra.mxu1 %v387_v10 }
  0x2b   :  { %337 = vmatprep.subr.bf16.mxu0 %v440_v0  ;;  %357 = vmatprep.subr.bf16.mxu1 %v440_v0 }
  0x2e   :  { %338 = vmatpush3.bf16.msra.mxu0 %v379_v7  ;;  %358 = vmatpush3.bf16.msra.mxu1 %v388_v12 }
  0x2f   :  { %339 = vmatprep.subr.bf16.mxu0 %v440_v0  ;;  %359 = vmatprep.subr.bf16.mxu1 %v440_v0 }
  0x32   :  { %340 = vmatpush3.bf16.msra.mxu0 %v380_v9  ;;  %360 = vmatpush3.bf16.msra.mxu1 %v389_v15 }
  0x33   :  { %341 = vmatprep.subr.bf16.mxu0 %v440_v0  ;;  %361 = vmatprep.subr.bf16.mxu1 %v440_v0 }
  0x36   :  { %342 = vmatpush3.bf16.msra.mxu0 %v381_v11  ;;  %362 = vmatpush3.bf16.msra.mxu1 %v390_v16 }
  0x37   :  { %343 = vmatprep.subr.bf16.mxu0 %v440_v0  ;;  %363 = vmatprep.subr.bf16.mxu1 %v440_v0 }
  0x3a   :  { %344 = vmatpush3.bf16.msra.mxu0 %v382_v13  ;;  %364 = vmatpush3.bf16.msra.mxu1 %v391_v17 }
  0x3d   :  { %346 = vmatmul.mubr.bf16.vlgmr.msra.gmra.mxu0 %v383_v14 }
  0xfd   :  { %v162_v19 = vpop.f32.mrf.mxu0 }
  0xfe   :  { %v163_v21 = vadd.f32 %v292_v18, %v162_v19 }
  0xff   :  { %v347_v20 = vpop.f32.mrf.mxu0 }
 0x100   :  { %v169_v25 = vmax.f32 %v163_v21, 0.0 }
 0x101   :  { %v165_v22 = vpop.f32.mrf.mxu0 }
 0x102   :  { %v166_v23 = vadd.f32 %v292_v18, %v165_v22 }
 0x103   :  { %v348_v24 = vpop.f32.mrf.mxu0 }
 0x104   :  { %v170_v26 = vmax.f32 %v166_v23, 0.0 }
 0x106   :  { %v171_v27 = vpack.c.bf16 %v170_v26, %v169_v25 }
 0x108   :  { %366 = vmatmul.mubr.bf16.vlgmr.msra.gmra.mxu1 %v171_v27 }
 0x1c8   :  { %v277_v29 = vpop.f32.mrf.mxu1 }
 0x1c9   :  { %v278_v30 = vadd.f32 %v302_v28, %v277_v29 }
 0x1ca   :  { %v367_v31 = vpop.f32.mrf.mxu1 }
 0x1cb   :  { %284 = vst [vmem:[%s498_s5] sm:$0xff] %v278_v30 }
 0x1cc   :  { %v280_v32 = vpop.f32.mrf.mxu1 }
 0x1cd   :  { %v281_v33 = vadd.f32 %v302_v28, %v280_v32 }
 0x1ce   :  { %v368_v34 = vpop.f32.mrf.mxu1 }
 0x1cf   :  { %285 = vst [vmem:[%s498_s5 + $0x8] sm:$0xff] %v281_v33 }
 0x1d0   :  { %290 = vsyncpa [#allocation4], 1 }
 0x1d1   :  { %291 = vsyncpa [#allocation6], 1 }

</bundles_post_ra>
